<compile_context>
chip_gen: v7x
topology: tpu7x:2x2x1
jax: 0.10.0
libtpu: 0.0.40
codegen_flags: <defaults>
</compile_context>

<pallas_src>
import functools
import numpy as np

import jax
import jax.numpy as jnp
from jax.experimental import pallas as pl
from jax.experimental.pallas import tpu as pltpu

# MXU input dtype (accumulation is always f32). Set to jnp.float32 for the
# exact (slower) path.
MM_DTYPE = jnp.bfloat16


def _round_up(x: int, m: int) -> int:
    return (x + m - 1) // m * m


def cheb_kernel(xT_ref, L_ref, wT_ref, b_ref, o_ref, U_ref, *, K, Fi, blk_n):
    """Chebyshev graph conv, transposed (node-dim-on-lanes) layout.

    Grid = (K-1, J): axis 0 = Chebyshev level k-1 (sequential), axis 1 = column
    block of the node dimension.
      xT_ref: (Fi, N_pad)      resident  f32   x^T
      L_ref:  (N_pad, blk_n)   blocked   bf16  column block of L_hat^T
      wT_ref: (Fo, K*Fi)       resident  bf16  fused projection weights
      b_ref:  (Fo, 1)          resident  f32   bias
      o_ref:  (Fo, blk_n)      blocked   f32   out^T block
      U_ref:  (K*Fi, N_pad)    scratch   f32   stack [T_0^T; T_1^T; ...; T_{K-1}^T]
    """
    col = pl.multiple_of(pl.program_id(1) * blk_n, blk_n)

    if K == 1:  # degenerate case: plain linear layer
        u0 = xT_ref[:, pl.ds(col, blk_n)].astype(MM_DTYPE)
        o_ref[...] = (jnp.dot(wT_ref[...], u0, preferred_element_type=jnp.float32)
                      + b_ref[...])
        return

    g = pl.program_id(0)                       # Chebyshev level k = g + 1

    # Stash T_0^T = x^T for this column block on the first level pass (needed
    # later for the k-2 term and the fused projection).
    @pl.when(g == 0)
    def _():
        U_ref[:Fi, pl.ds(col, blk_n)] = xT_ref[:, pl.ds(col, blk_n)]

    # T_{k-1}^T over ALL nodes.  At g==0 the stack is not fully populated yet,
    # so take it straight from x^T; afterwards it lives in the stack.
    row_prev = pl.multiple_of(g * Fi, Fi)
    u_prev = jnp.where(g == 0, xT_ref[...], U_ref[pl.ds(row_prev, Fi), :])

    # T_k^T[:, blk] = 2 * T_{k-1}^T @ L^T[:, blk] - T_{k-2}^T[:, blk]
    y = jnp.dot(u_prev.astype(MM_DTYPE), L_ref[...],
                preferred_element_type=jnp.float32)              # (Fi, blk_n) f32
    row_pp = pl.multiple_of(jnp.maximum(g - 1, 0) * Fi, Fi)
    u_pp = U_ref[pl.ds(row_pp, Fi), pl.ds(col, blk_n)]
    u_new = jnp.where(g == 0, y, 2.0 * y - u_pp)                 # f32 combine

    row_new = pl.multiple_of((g + 1) * Fi, Fi)
    U_ref[pl.ds(row_new, Fi), pl.ds(col, blk_n)] = u_new

    # Last level: ONE fused projection over all K Chebyshev terms + bias.
    @pl.when(g == K - 2)
    def _():
        u_stack = U_ref[:, pl.ds(col, blk_n)].astype(MM_DTYPE)   # (K*Fi, blk_n)
        out = jnp.dot(wT_ref[...], u_stack, preferred_element_type=jnp.float32)
        o_ref[...] = out + b_ref[...]


def cheb_gcn_forward(x, adj, W, b, *, K: int):
    """Build the rescaled Laplacian (PyG ChebConv sym norm, lambda_max=2.0),
    pad/transpose to a lane-dense layout, and run the Pallas kernel."""
    N, F_in = x.shape
    F_out = W.shape[-1]

    A = jnp.asarray(adj, jnp.float32)
    A = A * (1.0 - jnp.eye(N, dtype=jnp.float32))          # drop self-loops
    deg = A.sum(axis=1)
    dinv = jnp.where(deg > 0, jax.lax.rsqrt(deg), 0.0)      # masked inf -> 0
    # The kernel computes T^T @ L^T, so it consumes L_hat^T (identical to
    # L_hat for a symmetric adjacency, correct either way).
    LT = -(dinv[:, None] * A.T * dinv[None, :])

    # --- padding / tiling (lane dim multiple of 128, sublane dims of 8) ---
    N_pad = _round_up(N, 128)
    if N_pad <= 1024:
        blk_n = N_pad                   # single column block, L^T fully resident
    else:
        blk_n = 512 if N_pad % 512 == 0 else (256 if N_pad % 256 == 0 else 128)
    J = N_pad // blk_n
    Fi = _round_up(F_in, 8)
    Fo = _round_up(F_out, 8)

    LT_p = jnp.zeros((N_pad, N_pad), jnp.float32).at[:N, :N].set(LT).astype(MM_DTYPE)
    xT_p = jnp.zeros((Fi, N_pad), jnp.float32).at[:F_in, :N].set(
        jnp.asarray(x, jnp.float32).T)
    W_p = jnp.zeros((K, Fi, Fo), jnp.float32).at[:, :F_in, :F_out].set(
        jnp.asarray(W, jnp.float32))
    # wT_flat[o, k*Fi + f] = W[k, f, o]  (matches the row order of the U stack)
    wT_p = jnp.transpose(W_p, (2, 0, 1)).reshape(Fo, K * Fi).astype(MM_DTYPE)
    b_p = jnp.zeros((Fo, 1), jnp.float32).at[:F_out, 0].set(
        jnp.asarray(b, jnp.float32))

    grid = (max(K - 1, 1), J)
    outT = pl.pallas_call(
        functools.partial(cheb_kernel, K=K, Fi=Fi, blk_n=blk_n),
        out_shape=jax.ShapeDtypeStruct((Fo, N_pad), jnp.float32),
        grid_spec=pltpu.PrefetchScalarGridSpec(
            num_scalar_prefetch=0,
            grid=grid,
            in_specs=[
                pl.BlockSpec((Fi, N_pad), lambda g, j: (0, 0)),     # x^T (resident)
                pl.BlockSpec((N_pad, blk_n), lambda g, j: (0, j)),  # L^T column block
                pl.BlockSpec((Fo, K * Fi), lambda g, j: (0, 0)),    # fused W^T (resident)
                pl.BlockSpec((Fo, 1), lambda g, j: (0, 0)),         # bias (resident)
            ],
            out_specs=pl.BlockSpec((Fo, blk_n), lambda g, j: (0, j)),
            scratch_shapes=[pltpu.VMEM((K * Fi, N_pad), jnp.float32)],
        ),
        compiler_params=pltpu.CompilerParams(
            # Each Chebyshev level needs the full previous term, so both grid
            # axes are sequential (parallel sharding would split the scratch).
            dimension_semantics=("arbitrary", "arbitrary"),
            vmem_limit_bytes=48 * 1024 * 1024,
        ),
    )(xT_p, LT_p, wT_p, b_p)

    out = outT[:F_out, :N].T          # back to (N, F_out), strip padding
    # TODO(synk): F.dropout is identity in eval mode; training-mode dropout
    # (torch RNG) is not reproduced here.
    return jnp.squeeze(out)           # mirrors .squeeze()


def cheb_gcn_reference(x, adj, W, b, *, K: int):
    """Plain-JAX f32 reference for correctness checking."""
    N = x.shape[0]
    A = jnp.asarray(adj, jnp.float32) * (1.0 - jnp.eye(N, dtype=jnp.float32))
    deg = A.sum(axis=1)
    dinv = jnp.where(deg > 0, 1.0 / jnp.sqrt(deg), 0.0)
    L_hat = -(dinv[:, None] * A * dinv[None, :])
    Tx_prev = jnp.asarray(x, jnp.float32)
    out = Tx_prev @ W[0]
    if K > 1:
        Tx_cur = L_hat @ Tx_prev
        out = out + Tx_cur @ W[1]
        for k in range(2, K):
            Tx_new = 2.0 * (L_hat @ Tx_cur) - Tx_prev
            out = out + Tx_new @ W[k]
            Tx_prev, Tx_cur = Tx_cur, Tx_new
    return jnp.squeeze(out + b[None, :])


if __name__ == "__main__":
    N, F_IN, F_OUT, K = 128, 16, 32, 3

    key = jax.random.PRNGKey(0)
    k_adj, k_mask, k_x, k_w, k_b = jax.random.split(key, 5)

    # deterministic synthetic symmetric adjacency with zero diagonal, ~10% dense
    vals = jax.random.uniform(k_adj, (N, N), dtype=jnp.float32)
    mask = (jax.random.uniform(k_mask, (N, N)) < 0.1).astype(jnp.float32)
    A = vals * mask
    A = 0.5 * (A + A.T)
    A = A * (1.0 - jnp.eye(N, dtype=jnp.float32))

    # node features
    x = jax.random.normal(k_x, (N, F_IN), dtype=jnp.float32)

    # ChebConv parameters: K linear layers (no per-lin bias) + shared bias
    limit = float(np.sqrt(6.0 / (F_IN + F_OUT)))
    W = jax.random.uniform(k_w, (K, F_IN, F_OUT), dtype=jnp.float32,
                           minval=-limit, maxval=limit)
    b = jax.random.uniform(k_b, (F_OUT,), dtype=jnp.float32,
                           minval=-limit, maxval=limit)

    out = cheb_gcn_forward(x, A, W, b, K=K)
    out = jax.block_until_ready(out)

    ref = cheb_gcn_reference(x, A, W, b, K=K)
    # bf16 MXU inputs (f32 accumulation) vs f32 reference -> relaxed tolerance.
    np.testing.assert_allclose(np.asarray(out), np.asarray(ref),
                               rtol=5e-2, atol=5e-2)

    print("KERNEL_OK")
</pallas_src>

<mosaic_0001>
module attributes {stable_mosaic.version = 11 : i64} {
  func.func @cheb_kernel(%arg0: i32, %arg1: i32, %arg2: memref<16x128xf32, #tpu.memory_space<vmem>>, %arg3: memref<128x128xbf16, #tpu.memory_space<vmem>>, %arg4: memref<32x48xbf16, #tpu.memory_space<vmem>>, %arg5: memref<32x1xf32, #tpu.memory_space<vmem>>, %arg6: memref<32x128xf32, #tpu.memory_space<vmem>>, %arg7: memref<48x128xf32, #tpu.memory_space<vmem>>) attributes {dimension_semantics = [#tpu.dimension_semantics<arbitrary>, #tpu.dimension_semantics<arbitrary>], iteration_bounds = array<i64: 2, 1>, scalar_prefetch = 0 : i64, scratch_operands = 1 : i64, tpu.core_type = #tpu.core_type<tc>, window_params = [{pipeline_mode = #tpu.pipeline_mode<synchronous>, transform_indices = @transform_0, window_bounds = array<i64: 16, 128>}, {transform_indices = @transform_1, window_bounds = array<i64: 128, 128>}, {pipeline_mode = #tpu.pipeline_mode<synchronous>, transform_indices = @transform_2, window_bounds = array<i64: 32, 48>}, {pipeline_mode = #tpu.pipeline_mode<synchronous>, transform_indices = @transform_3, window_bounds = array<i64: 32, 1>}, {transform_indices = @transform_4, window_bounds = array<i64: 32, 128>}]} {
    %c128_i32 = arith.constant 128 : i32
    %0 = arith.muli %arg1, %c128_i32 : i32
    %1 = tpu.assume_multiple %0, 128 : i32
    %c0_i32 = arith.constant 0 : i32
    %2 = arith.cmpi eq, %arg0, %c0_i32 : i32
    %3 = arith.extui %2 : i1 to i32
    %c0_i32_0 = arith.constant 0 : i32
    %4 = arith.cmpi ne, %3, %c0_i32_0 : i32
    scf.if %4 {
      %c0_14 = arith.constant 0 : index
      %36 = arith.index_cast %1 : i32 to index
      %37 = vector.load %arg2[%c0_14, %36] : memref<16x128xf32, #tpu.memory_space<vmem>>, vector<16x128xf32>
      %c0_15 = arith.constant 0 : index
      %38 = arith.index_cast %1 : i32 to index
      %39 = vector.load %arg7[%c0_15, %38] : memref<48x128xf32, #tpu.memory_space<vmem>>, vector<16x128xf32>
      tpu.vector_store %arg7[%c0_15, %38], %37 {strides = array<i32>} : memref<48x128xf32, #tpu.memory_space<vmem>>, vector<16x128xf32>,
    } else {
    }
    %c16_i32 = arith.constant 16 : i32
    %5 = arith.muli %arg0, %c16_i32 : i32
    %6 = tpu.assume_multiple %5, 16 : i32
    %c0_i32_1 = arith.constant 0 : i32
    %7 = arith.cmpi eq, %arg0, %c0_i32_1 : i32
    %c0 = arith.constant 0 : index
    %c0_2 = arith.constant 0 : index
    %8 = vector.load %arg2[%c0, %c0_2] : memref<16x128xf32, #tpu.memory_space<vmem>>, vector<16x128xf32>
    %9 = arith.index_cast %6 : i32 to index
    %c0_3 = arith.constant 0 : index
    %10 = vector.load %arg7[%9, %c0_3] : memref<48x128xf32, #tpu.memory_space<vmem>>, vector<16x128xf32>
    %11 = arith.select %7, %8, %10 : vector<16x128xf32>
    %12 = arith.truncf %11 : vector<16x128xf32> to vector<16x128xbf16>
    %c0_4 = arith.constant 0 : index
    %c0_5 = arith.constant 0 : index
    %13 = vector.load %arg3[%c0_4, %c0_5] : memref<128x128xbf16, #tpu.memory_space<vmem>>, vector<128x128xbf16>
    %cst = arith.constant dense<0.000000e+00> : vector<16x128xf32>
    %14 = tpu.matmul %12, %13, %cst {dimension_numbers = #tpu.dot_dimension_numbers<[1], [0], [0], [1], [0, 0, 1, 1], [], []>} : vector<16x128xbf16>, vector<128x128xbf16>, vector<16x128xf32> -> vector<16x128xf32>
    %c1_i32 = arith.constant 1 : i32
    %15 = arith.subi %arg0, %c1_i32 : i32
    %c0_i32_6 = arith.constant 0 : i32
    %16 = arith.maxsi %15, %c0_i32_6 : i32
    %c16_i32_7 = arith.constant 16 : i32
    %17 = arith.muli %16, %c16_i32_7 : i32
    %18 = tpu.assume_multiple %17, 16 : i32
    %19 = arith.index_cast %18 : i32 to index
    %20 = arith.index_cast %1 : i32 to index
    %21 = vector.load %arg7[%19, %20] : memref<48x128xf32, #tpu.memory_space<vmem>>, vector<16x128xf32>
    %c0_i32_8 = arith.constant 0 : i32
    %22 = arith.cmpi eq, %arg0, %c0_i32_8 : i32
    %cst_9 = arith.constant 2.000000e+00 : f32
    %23 = vector.broadcast %cst_9 : f32 to vector<16x128xf32>
    %24 = arith.mulf %23, %14 : vector<16x128xf32>
    %25 = arith.subf %24, %21 : vector<16x128xf32>
    %26 = arith.select %22, %14, %25 : vector<16x128xf32>
    %c1_i32_10 = arith.constant 1 : i32
    %27 = arith.addi %arg0, %c1_i32_10 : i32
    %c16_i32_11 = arith.constant 16 : i32
    %28 = arith.muli %27, %c16_i32_11 : i32
    %29 = tpu.assume_multiple %28, 16 : i32
    %30 = arith.index_cast %29 : i32 to index
    %31 = arith.index_cast %1 : i32 to index
    %32 = vector.load %arg7[%30, %31] : memref<48x128xf32, #tpu.memory_space<vmem>>, vector<16x128xf32>
    tpu.vector_store %arg7[%30, %31], %26 {strides = array<i32>} : memref<48x128xf32, #tpu.memory_space<vmem>>, vector<16x128xf32>,
    %c1_i32_12 = arith.constant 1 : i32
    %33 = arith.cmpi eq, %arg0, %c1_i32_12 : i32
    %34 = arith.extui %33 : i1 to i32
    %c0_i32_13 = arith.constant 0 : i32
    %35 = arith.cmpi ne, %34, %c0_i32_13 : i32
    scf.if %35 {
      %c0_14 = arith.constant 0 : index
      %36 = arith.index_cast %1 : i32 to index
      %37 = vector.load %arg7[%c0_14, %36] : memref<48x128xf32, #tpu.memory_space<vmem>>, vector<48x128xf32>
      %38 = arith.truncf %37 : vector<48x128xf32> to vector<48x128xbf16>
      %c0_15 = arith.constant 0 : index
      %c0_16 = arith.constant 0 : index
      %39 = vector.load %arg4[%c0_15, %c0_16] : memref<32x48xbf16, #tpu.memory_space<vmem>>, vector<32x48xbf16>
      %cst_17 = arith.constant dense<0.000000e+00> : vector<32x128xf32>
      %40 = tpu.matmul %39, %38, %cst_17 {dimension_numbers = #tpu.dot_dimension_numbers<[1], [0], [0], [1], [0, 0, 1, 1], [], []>} : vector<32x48xbf16>, vector<48x128xbf16>, vector<32x128xf32> -> vector<32x128xf32>
      %c0_18 = arith.constant 0 : index
      %c0_19 = arith.constant 0 : index
      %41 = vector.load %arg5[%c0_18, %c0_19] : memref<32x1xf32, #tpu.memory_space<vmem>>, vector<32x1xf32>
      %42 = vector.broadcast %41 : vector<32x1xf32> to vector<32x128xf32>
      %43 = arith.addf %40, %42 : vector<32x128xf32>
      %c0_20 = arith.constant 0 : index
      %c0_21 = arith.constant 0 : index
      %44 = vector.load %arg6[%c0_20, %c0_21] : memref<32x128xf32, #tpu.memory_space<vmem>>, vector<32x128xf32>
      tpu.vector_store %arg6[%c0_20, %c0_21], %43 {strides = array<i32>} : memref<32x128xf32, #tpu.memory_space<vmem>>, vector<32x128xf32>,
    } else {
    }
    return
  }
  func.func @transform_0(%arg0: i32, %arg1: i32) -> (i32, i32) {
    %c0_i32 = arith.constant 0 : i32
    %c0_i32_0 = arith.constant 0 : i32
    %c0_i32_1 = arith.constant 0 : i32
    return %c0_i32, %c0_i32_0 : i32, i32
  }
  func.func @transform_1(%arg0: i32, %arg1: i32) -> (i32, i32) {
    %c0_i32 = arith.constant 0 : i32
    %c0_i32_0 = arith.constant 0 : i32
    return %c0_i32, %arg1 : i32, i32
  }
  func.func @transform_2(%arg0: i32, %arg1: i32) -> (i32, i32) {
    %c0_i32 = arith.constant 0 : i32
    %c0_i32_0 = arith.constant 0 : i32
    %c0_i32_1 = arith.constant 0 : i32
    return %c0_i32, %c0_i32_0 : i32, i32
  }
  func.func @transform_3(%arg0: i32, %arg1: i32) -> (i32, i32) {
    %c0_i32 = arith.constant 0 : i32
    %c0_i32_0 = arith.constant 0 : i32
    %c0_i32_1 = arith.constant 0 : i32
    return %c0_i32, %c0_i32_0 : i32, i32
  }
  func.func @transform_4(%arg0: i32, %arg1: i32) -> (i32, i32) {
    %c0_i32 = arith.constant 0 : i32
    %c0_i32_0 = arith.constant 0 : i32
    return %c0_i32, %arg1 : i32, i32
  }
}

</mosaic_0001>

<bundles_post_ra>
// kernel: tpu_custom_call.1
= control target key start
LH: loop header
LB: loop body
LE: loop exit
PB: predicated region body
PF: predicated region fallthrough
CT: control target
= control target key end

     0   :  { %9 = vsyncpa [#allocation4], 0  ;;  %s946_s0 = inlined_call_operand.vmem [shape: f32[16,128], index: 0, kind: input, shape index: {}]   ;;  %s947_s1 = inlined_call_operand.hbm [shape: bf16[128,128], index: 1, kind: input, shape index: {}]   ;;  %s948_s2 = inlined_call_operand.vmem [shape: bf16[32,48], index: 2, kind: input, shape index: {}]   ;;  %s949_s3 = inlined_call_operand.vmem [shape: f32[32,1], index: 3, kind: input, shape index: {}]   ;;  %s950_s4 = inlined_call_operand.hbm [shape: f32[32,128], index: 4, kind: output, shape index: {}]  }
   0x1   :  { %10 = vsyncpa [#allocation5], 0  ;;  %s797_s15 = smov 0   ;;  %s799_s16 = smov 0  }
   0x2   :  { %s801_s17 = smov 0  }
   0x3 LB: > { %s543_s18 = sadd.s32 4294967295, %s761_s17   ;;  %s28_s19 = sadd.s32 1, %s757_s16  ;;  %s761_s17 = sphi %s801_s17, %s16_s17   ;;  %s757_s16 = sphi %s799_s16, %s963_s16   ;;  %s753_s15 = sphi %s797_s15, %s962_s15  }
   0x4   : > { %p30_p0 = scmp.ge.s32.totalorder %s28_s19, 2  ;;  %p544_p1 = scmp.ge.s32.totalorder %s761_s17, 1 }
   0x5   : > { %p148_p2 = scmp.lt.s32.totalorder %s761_s17, 3  ;;  %p824_p4 = scmp.eq.s32.totalorder %s543_s18, 0 }
   0x6   : > { %s965_s19 = smov (%p30_p0, %s28_s19), 0  ;;  %s763_s22 = smov [#allocation3]  }
   0x7   : > { %p818_p3 = pnand %p544_p1, %p148_p2  ;;  %s165_s23 = sshll.u32 %s763_s22, 4  ;;  %s166_s23 = int_to_ptr.vmem [resolvable:$true] %s165_s23 }
   0x8   : > { %s955_s21 = scalar_select %p824_p4, 1, 0 }
   0x9   : > { %s954_s20 = scalar_select %p818_p3, 1, 0 }
   0xa   : > { %p624_p5 = pneg %p818_p3  ;;  %s677_s27 = scalar_lea.hbm %s947_s1, 1024 }
   0xb   : > { %p678_p7 = scmp.ne.s32.totalorder %s947_s1, %s677_s27  ;;  %p684_p11 = scmp.lt.u32.totalorder %s677_s27, %s947_s1 }
   0xc   : > { %p832_p6 = pnand %p824_p4, %p624_p5 }
   0xe   : > { %p679_p8 = pneg %p832_p6 }
  0x10   : > { %p680_p9 = pnand %p679_p8, %p678_p7 }
  0x12   : > { %p681_p10 = pneg %p680_p9 }
  0x14   : > { %p686_p12 = pnand %p684_p11, %p681_p10 }
  0x16   : > { %689 = shalt.err (!%p686_p12)
}
  0x17   : > { %s690_s6 = scalar_lea.vmem %s166_s23, 1024  ;;  %p698_p2 = scmp.lt.s32.totalorder %s166_s23, %s166_s23 }
  0x18   : > { %p691_p13 = scmp.ne.s32.totalorder %s166_s23, %s690_s6  ;;  %p699_p5 = scmp.lt.s32.totalorder %s690_s6, %s690_s6 }
  0x1a   : > { %p693_p0 = pnand %p691_p13, %p679_p8  ;;  %p700_p4 = por %p699_p5, %p698_p2 }
  0x1c   : > { %p694_p1 = pneg %p693_p0 }
  0x1e   : > { %p701_p3 = pnand %p700_p4, %p694_p1 }
  0x20   : > { %704 = shalt.err (!%p701_p3)
}
  0x21   : > { %s764_s7 = smov 64   ;;  %s765_s8 = smov 4  }
  0x22   : > { %627 = dma.hbm_to_vmem [thread:$0]  (!%p832_p6), %s947_s1, 1024, %s166_s23, [#allocation4], %s764_s7, %s764_s7, %s765_s8  }
  0x23   : > { %p957_p7 = scmp.ne.s32.totalorder %s954_s20, 0 }
  0x24   : > { %p958_p9 = scmp.ne.s32.totalorder (!%p957_p7), %s955_s21, 0 }
  0x25   : > { %187 = sbr.rel (%p957_p7) target bundleno = 572 (0x23c), region = 36 }
  0x2c   : > { %744 = dma.done.wait (%p958_p9), [#allocation4], 1024  }
  0x2d   : > { %746 = vsyncadd (%p958_p9), [#allocation4], 4294966272  ;;  %p205_p4 = scmp.eq.s32.totalorder %s753_s15, 0  ;;  %p548_p3 = scmp.ne.s32.totalorder %s753_s15, 0 }
  0x2e   : > { %v212_v0 = vld [vmem:[%s946_s0] sm:$0xff] (!%p548_p3)  ;;  %v213_v1 = vld [vmem:[%s946_s0 + $0x8] sm:$0xff] (!%p548_p3) }
  0x2f   : > { %208 = sbr.rel (%p548_p3) target bundleno = 54 (0x36), region = 44  ;;  %215 = vst [vmem:[#allocation2] sm:$0xff] (!%p548_p3), %v212_v0  ;;  %216 = vst [vmem:[#allocation2 + $0x8] sm:$0xff] (!%p548_p3), %v213_v1 }
  0x36 PF: > { %v665_v2 = vld [vmem:[#allocation3] sm:$0xff]   ;;  %v766_v3 = vmov 0.0   ;;  %v666_v4 = vld [vmem:[#allocation3 + $0x8] sm:$0xff]   ;;  %vm767_vm0 = vmmov 0   ;;  %v667_v5 = vld [vmem:[#allocation3 + $0x10] sm:$0xff]   ;;  %s549_s21 = sshll.u32 %s753_s15, 4 }
  0x37   : > { %586 = vmatprep.subr.bf16.mxu0 %v766_v3  ;;  %602 = vmatprep.mubr.msk.bf16.mxu0 %vm767_vm0, %v766_v3  ;;  %v668_v6 = vld [vmem:[#allocation3 + $0x18] sm:$0xff]   ;;  %v669_v7 = vld [vmem:[#allocation3 + $0x20] sm:$0xff]   ;;  %s223_s20 = scalar_select %p205_p4, 1, 0  ;;  %v670_v8 = vld [vmem:[#allocation3 + $0x28] sm:$0xff]  }
  0x38   : > { %587 = vmatpush3.bf16.msra.mxu0 %v665_v2  ;;  %v671_v10 = vld [vmem:[#allocation3 + $0x30] sm:$0xff]   ;;  %v219_v12 = vld [vmem:[%s946_s0 + $0x8] sm:$0xff]  ;;  %s220_s26 = scalar_lea.vmem [#allocation2], %s549_s21  ;;  %s558_s27 = sadd.s32 4294967295, %s753_s15 }
  0x39   : > { %588 = vmatprep.subr.bf16.mxu0 %v766_v3  ;;  %v224_v9 = vstv %s223_s20  ;;  %v218_v11 = vld [vmem:[%s946_s0] sm:$0xff]  ;;  %v222_v14 = vld [vmem:[%s220_s26 + $0x8] sm:$0xff]  ;;  %p335_p6 = scmp.gt.s32.totalorder %s558_s27, 0  ;;  %p563_p8 = scmp.ne.s32.totalorder %s753_s15, 1 }
  0x3a   : > { %v221_v13 = vld [vmem:[%s220_s26] sm:$0xff]  ;;  %vm875_vm1 = vcmp.eq.s32.totalorder %v224_v9, 1  ;;  %v672_v16 = vld [vmem:[#allocation3 + $0x38] sm:$0xff]   ;;  %vm408_vm2 = vcmask (!%p563_p8), 392192   ;;  %v768_v39 = vmov (!%p563_p8), 0   ;;  %v376_v42 = vld [vmem:[%s949_s3 + $0x10] sm:$0xff] (!%p563_p8) }
  0x3b   : > { %v226_v17 = vsel %vm875_vm1, %v218_v11, %v221_v13  ;;  %v227_v18 = vsel %vm875_vm1, %v219_v12, %v222_v14  ;;  %s967_s27 = smov (!%p335_p6, %s558_s27), 0  ;;  %674 = vset.pattern.permute.xlu1 (!%p563_p8), %v768_v39  ;;  %673 = vset.pattern.permute.xlu0 (!%p563_p8), %v768_v39  ;;  %v675_v41 = vld [vmem:[%s948_s2] sm:$0xff] (!%p563_p8)   ;;  %v377_v45 = vld [vmem:[%s949_s3 + $0x18] sm:$0xff] (!%p563_p8)  ;;  %v375_v46 = vld [vmem:[%s949_s3 + $0x8] sm:$0xff] (!%p563_p8) }
  0x3c   : > { %589 = vmatpush3.bf16.msra.mxu0 %v666_v4  ;;  %v228_v19 = vpack.c.bf16 %v227_v18, %v226_v17  ;;  %s559_s28 = sshll.u32 %s967_s27, 4  ;;  %v374_v43 = vld [vmem:[%s949_s3] sm:$0xff] (!%p563_p8)  ;;  %390 = vperm.xlu1 (!%p563_p8), %674, %v376_v42   ;;  %v676_v47 = vld [vmem:[%s948_s2 + $0x8] sm:$0xff] (!%p563_p8)  }
  0x3d   : > { %590 = vmatprep.subr.bf16.mxu0 %v766_v3  ;;  %s341_s29 = scalar_lea.vmem [#allocation2], %s559_s28  ;;  %380 = vperm.xlu0 (!%p563_p8), %673, %v374_v43  }
  0x3e   : > { %v342_v21 = vld [vmem:[%s341_s29] sm:$0xff]  ;;  %v343_v24 = vld [vmem:[%s341_s29 + $0x8] sm:$0xff] }
  0x40   : > { %591 = vmatpush3.bf16.msra.mxu0 %v667_v5  ;;  %395 = vperm.xlu1 (!%p563_p8), %674, %v377_v45  }
  0x41   : > { %592 = vmatprep.subr.bf16.mxu0 %v766_v3  ;;  %385 = vperm.xlu0 (!%p563_p8), %673, %v375_v46  }
  0x44   : > { %593 = vmatpush3.bf16.msra.mxu0 %v668_v6 }
  0x45   : > { %594 = vmatprep.subr.bf16.mxu0 %v766_v3 }
  0x48   : > { %595 = vmatpush3.bf16.msra.mxu0 %v669_v7 }
  0x49   : > { %596 = vmatprep.subr.bf16.mxu0 %v766_v3 }
  0x4c   : > { %597 = vmatpush3.bf16.msra.mxu0 %v670_v8 }
  0x4d   : > { %598 = vmatprep.subr.bf16.mxu0 %v766_v3 }
  0x50   : > { %599 = vmatpush3.bf16.msra.mxu0 %v671_v10 }
  0x51   : > { %600 = vmatprep.subr.bf16.mxu0 %v766_v3 }
  0x54   : > { %601 = vmatpush3.bf16.msra.mxu0 %v672_v16 }
  0x57   : > { %603 = vmatmul.mubr.bf16.vlgmr.msra.gmra.mrb[0].mxu0 %v228_v19 }
  0x58   : > { %612 = vmatprep.mubr.msk.bf16.mxu0 (!%p563_p8), %vm408_vm2, %v675_v41 }
  0xbb   : > { %v391_v48 = vpop.permute.xlu1 (!%p563_p8), %390 }
  0xbc   : > { %v381_v49 = vpop.permute.xlu0 (!%p563_p8), %380 }
  0xbf   : > { %v396_v53 = vpop.permute.xlu1 (!%p563_p8), %395 }
  0xc0   : > { %v386_v56 = vpop.permute.xlu0 (!%p563_p8), %385 }
 0x12a   : > { %v327_v20 = vpop.f32.mrb[0].mxu0 }
 0x12b   : > { %v344_v22 = vmul.f32 2.0, %v327_v20  ;;  %v604_v23 = vpop.f32.mrb[1].mxu0 }
 0x12c   : > { %v330_v25 = vpop.f32.mrb[2].mxu0  ;;  %359 = sbr.rel (%p563_p8) target bundleno = 546 (0x222), region = 48 }
 0x12d   : > { %v346_v26 = vsub.f32 %v344_v22, %v342_v21  ;;  %v345_v27 = vmul.f32 2.0, %v330_v25  ;;  %v605_v28 = vpop.f32.mrb[3].mxu0 }
 0x12f   : > { %v348_v29 = vsel %vm875_vm1, %v327_v20, %v346_v26  ;;  %v347_v30 = vsub.f32 %v345_v27, %v343_v24 }
 0x130   : > { %561 = vst [vmem:[%s220_s26 + $0x10] sm:$0xff] %v348_v29 }
 0x131   : > { %v349_v31 = vsel %vm875_vm1, %v330_v25, %v347_v30 }
 0x132   : > { %562 = vst [vmem:[%s220_s26 + $0x18] sm:$0xff] %v349_v31 }
 0x139   : > { %v361_v32 = vld [vmem:[#allocation2] sm:$0xff]  ;;  %v362_v33 = vld [vmem:[#allocation2 + $0x8] sm:$0xff]  ;;  %v363_v34 = vld [vmem:[#allocation2 + $0x10] sm:$0xff] }
 0x13a   : > { %v367_v35 = vpack.c.bf16 %v362_v33, %v361_v32  ;;  %v364_v36 = vld [vmem:[#allocation2 + $0x18] sm:$0xff]  ;;  %v365_v37 = vld [vmem:[#allocation2 + $0x20] sm:$0xff]  ;;  %v366_v38 = vld [vmem:[#allocation2 + $0x28] sm:$0xff] }
 0x13b   : > { %v368_v40 = vpack.c.bf16 %v364_v36, %v363_v34  ;;  %v369_v44 = vpack.c.bf16 %v366_v38, %v365_v37 }
 0x13c   : > { %606 = vmatprep.subr.bf16.mxu0 %v367_v35 }
 0x13d   : > { %607 = vmatpush3.bf16.msra.mxu0 %v367_v35 }
 0x13e   : > { %608 = vmatprep.subr.bf16.mxu0 %v368_v40 }
 0x141   : > { %609 = vmatpush3.bf16.msra.mxu0 %v368_v40 }
 0x142   : > { %610 = vmatprep.subr.bf16.mxu0 %v369_v44 }
 0x145   : > { %611 = vmatpush3.bf16.msra.mxu0 %v369_v44 }
 0x148   : > { %613 = vmatmul.mubr.msk.bf16.vlgmr.msra.gmra.mrb[0].mxu0 %vm408_vm2, %v676_v47 }
 0x21b   : > { %v614_v50 = vpop.f32.mrb[0].mxu0 }
 0x21c   : > { %v458_v51 = vadd.f32 %v614_v50, %v391_v48  ;;  %v449_v52 = vpop.f32.mrb[1].mxu0 }
 0x21d   : > { %v450_v54 = vadd.f32 %v449_v52, %v381_v49  ;;  %v615_v55 = vpop.f32.mrb[2].mxu0 }
 0x21e   : > { %466 = vst [vmem:[#allocation6 + $0x10] sm:$0xff] %v458_v51  ;;  %v461_v57 = vadd.f32 %v615_v55, %v396_v53  ;;  %v452_v58 = vpop.f32.mrb[3].mxu0 }
 0x21f   : > { %464 = vst [vmem:[#allocation6] sm:$0xff] %v450_v54  ;;  %v453_v59 = vadd.f32 %v452_v58, %v386_v56 }
 0x220   : > { %467 = vst [vmem:[#allocation6 + $0x18] sm:$0xff] %v461_v57 }
 0x221   : > { %465 = vst [vmem:[#allocation6 + $0x8] sm:$0xff] %v453_v59 }
 0x222 PF: > { %p911_p10 = scmp.eq.s32.totalorder %s543_s18, 1  ;;  %s769_s21 = smov [#allocation6]  }
 0x223   : > { %s476_s22 = sshll.u32 %s769_s21, 4  ;;  %s477_s22 = int_to_ptr.vmem [resolvable:$true] %s476_s22 }
 0x224   : > { %s705_s23 = scalar_lea.vmem %s477_s22, 512  ;;  %p712_p0 = scmp.lt.s32.totalorder %s477_s22, %s477_s22 }
 0x225   : > { %p706_p11 = scmp.ne.s32.totalorder %s477_s22, %s705_s23  ;;  %p713_p1 = scmp.lt.s32.totalorder %s705_s23, %s705_s23 }
 0x227   : > { %p707_p12 = pnand %p706_p11, %p911_p10  ;;  %p714_p2 = por %p713_p1, %p712_p0 }
 0x229   : > { %p708_p13 = pneg %p707_p12 }
 0x22b   : > { %p715_p5 = pnand %p714_p2, %p708_p13 }
 0x22d   : > { %718 = shalt.err (!%p715_p5)
}
 0x22e   : > { %s719_s18 = scalar_lea.hbm %s950_s4, 512 }
 0x22f   : > { %p720_p7 = scmp.ne.s32.totalorder %s950_s4, %s719_s18  ;;  %p725_p3 = scmp.lt.u32.totalorder %s719_s18, %s950_s4 }
 0x231   : > { %p721_p9 = pnand %p720_p7, %p911_p10 }
 0x233   : > { %p722_p4 = pneg %p721_p9 }
 0x235   : > { %p727_p6 = pnand %p725_p3, %p722_p4 }
 0x237   : > { %730 = shalt.err (!%p727_p6)
}
 0x238   : > { %s770_s30 = smov 128   ;;  %s771_s5 = smov 8  }
 0x239   : > { %621 = dma.vmem_to_hbm [thread:$0]  (%p911_p10), %s477_s22, 512, %s950_s4, [#allocation5], %s770_s30, %s770_s30, %s771_s5  }
 0x23a   : > { %748 = dma.done.wait (%p911_p10), [#allocation5], 512  }
 0x23b   : > { %750 = vsyncadd (%p911_p10), [#allocation5], 4294966784 }
 0x23c PF: > { %s16_s17 = sadd.s32 1, %s761_s17   ;;  %s962_s15 = smov %s757_s16 }
 0x23d   : > { %p13_p8 = scmp.ge.s32.totalorder %s16_s17, 4   ;;  %s963_s16 = smov %s965_s19 }
 0x23f   :  { %15 = sbr.rel (!%p13_p8) target bundleno = 3 (0x3), region = 81 }
 0x246   :  { %492 = vsyncpa [#allocation4], 1 }
 0x247   :  { %494 = vsyncpa [#allocation4 + $0x1], 1 }
 0x248   :  { %495 = vsyncpa [#allocation5], 1 }
 0x249   :  { %497 = vsyncpa [#allocation5 + $0x1], 1 }

</bundles_post_ra>
